<compile_context>
chip_gen: v5e
topology: v5e:2x2
jax: 0.10.0
libtpu: 0.0.40
codegen_flags: <defaults>
</compile_context>

<pallas_src>
import math

import jax
import jax.numpy as jnp
from jax.experimental import pallas as pl
from jax.experimental.pallas import tpu as pltpu


def residual_linear_kernel(x_ref, w_ref, b_ref, o_ref):
    """out_tile = x_tile @ W + b + x_tile   (residual add fused in-kernel)."""
    x = x_ref[...]                                    # (tm, Dp) f32
    # bf16 MXU inputs, f32 accumulation.
    y = jnp.dot(x.astype(jnp.bfloat16), w_ref[...],
                preferred_element_type=jnp.float32)   # (tm, Dp) f32
    # bias + residual add kept in f32 (VPU f32 path works on every gen).
    o_ref[...] = (y + b_ref[...] + x).astype(o_ref.dtype)


def _round_up(v, m):
    return (v + m - 1) // m * m


def _choose_tile_rows(rows_p, Dp):
    """Row tile so each grid step streams >= ~2 MiB of x (f32)."""
    target = (2 * 1024 * 1024) // (4 * Dp)
    tm = max(256, min(2048, (max(target, 256) // 256) * 256))
    if tm >= rows_p:
        # Whole input fits in one tile (a full-dim block is always legal).
        tm = rows_p
        # v7x has 2 TensorCores: prefer a grid of >= 2 when splitting does
        # not create tiny tiles.
        if rows_p >= 1024:
            tm = _round_up(pl.cdiv(rows_p, 2), 256)
    return tm


def make_residual_linear(w, b):
    """Prepare fn = Linear(D, D) once; return forward(x) = x @ W + b + x.

    Parameter padding + bf16 cast are hoisted out of the per-call path.
    """
    D = w.shape[0]
    assert w.shape == (D, D) and b.shape == (D,)
    Dp = _round_up(D, 128)

    # Zero-padded params: padded rows/cols are zero, so valid outputs are
    # exact. W stored bf16 (MXU input), bias kept f32.
    wp = jnp.zeros((Dp, Dp), jnp.bfloat16).at[:D, :D].set(w.astype(jnp.bfloat16))
    bp = jnp.zeros((1, Dp), jnp.float32).at[0, :D].set(b.astype(jnp.float32))

    def forward(x):
        lead = x.shape[:-1]
        assert x.shape[-1] == D
        rows = math.prod(lead)
        rows_p = _round_up(rows, 8)

        x2 = x.reshape(rows, D)
        padded = (rows_p != rows) or (Dp != D)
        if padded:
            # Zero padding is semantics-preserving (padded columns of x and
            # padded rows/cols of W / b are zero).
            x2 = jnp.zeros((rows_p, Dp), x.dtype).at[:rows, :D].set(x2)

        tm = _choose_tile_rows(rows_p, Dp)
        grid_rows = pl.cdiv(rows_p, tm)   # ragged last block handled by Pallas

        # VMEM budget: double-buffered x/out tiles + single-buffered W/bias.
        tile_bytes = tm * Dp * 4
        vmem_needed = 4 * tile_bytes + Dp * Dp * 2 + 2 * Dp * 4
        vmem_limit = min(max(2 * vmem_needed + (4 << 20), 16 << 20), 64 << 20)

        out2 = pl.pallas_call(
            residual_linear_kernel,
            out_shape=jax.ShapeDtypeStruct((rows_p, Dp), x.dtype),
            grid_spec=pltpu.PrefetchScalarGridSpec(
                num_scalar_prefetch=0,
                grid=(grid_rows,),
                in_specs=[
                    # x tile (streamed, double-buffered by default)
                    pl.BlockSpec((tm, Dp), lambda i: (i, 0)),
                    # W: constant block index -> VMEM-resident, single-buffered
                    pl.BlockSpec((Dp, Dp), lambda i: (0, 0),
                                 pipeline_mode=pl.Buffered(1)),
                    # bias: resident, single-buffered
                    pl.BlockSpec((1, Dp), lambda i: (0, 0),
                                 pipeline_mode=pl.Buffered(1)),
                ],
                out_specs=pl.BlockSpec((tm, Dp), lambda i: (i, 0)),
            ),
            compiler_params=pltpu.CompilerParams(
                dimension_semantics=("parallel",),
                vmem_limit_bytes=vmem_limit,
            ),
        )(x2, wp, bp)

        if padded:
            out2 = out2[:rows, :D]
        return out2.reshape(*lead, D)

    return jax.jit(forward)


def reference_forward(x, w, b):
    return jnp.einsum("...d,de->...e", x, w) + b + x


if __name__ == "__main__":
    key = jax.random.PRNGKey(0)
    kx, kw, kb, kx2, kw2, kb2 = jax.random.split(key, 6)

    # Case 1: small, unaligned feature dim (exercises the padded path).
    B, N, D = 2, 8, 32
    x = jax.random.normal(kx, (B, N, D), dtype=jnp.float32)
    w = jax.random.normal(kw, (D, D), dtype=jnp.float32) * 0.02
    b = jax.random.normal(kb, (D,), dtype=jnp.float32) * 0.01
    fwd = make_residual_linear(w, b)
    out = jax.block_until_ready(fwd(x))
    ref = reference_forward(x, w, b)
    assert out.shape == (B, N, D)
    # bf16 MXU inputs vs f32 reference -> loosened tolerance (expected).
    assert jnp.allclose(out, ref, atol=1e-2, rtol=1e-2), "mismatch (padded path)"

    # Case 2: lane/sublane-aligned shapes (fast path: no pad copy, no slice).
    B2, N2, D2 = 2, 64, 128
    x2 = jax.random.normal(kx2, (B2, N2, D2), dtype=jnp.float32)
    w2 = jax.random.normal(kw2, (D2, D2), dtype=jnp.float32) * 0.02
    b2 = jax.random.normal(kb2, (D2,), dtype=jnp.float32) * 0.01
    fwd2 = make_residual_linear(w2, b2)
    out2 = jax.block_until_ready(fwd2(x2))
    ref2 = reference_forward(x2, w2, b2)
    assert out2.shape == (B2, N2, D2)
    assert jnp.allclose(out2, ref2, atol=1e-2, rtol=1e-2), "mismatch (fast path)"

    print("KERNEL_OK")
</pallas_src>

<mosaic_0001>
module attributes {stable_mosaic.version = 11 : i64} {
  func.func @residual_linear_kernel(%arg0: i32, %arg1: memref<16x128xf32, #tpu.memory_space<vmem>>, %arg2: memref<128x128xbf16, #tpu.memory_space<vmem>>, %arg3: memref<1x128xf32, #tpu.memory_space<vmem>>, %arg4: memref<16x128xf32, #tpu.memory_space<vmem>>) attributes {dimension_semantics = [#tpu.dimension_semantics<parallel>], iteration_bounds = array<i64: 1>, scalar_prefetch = 0 : i64, scratch_operands = 0 : i64, tpu.core_type = #tpu.core_type<tc>, window_params = [{transform_indices = @transform_0, window_bounds = array<i64: 16, 128>}, {pipeline_mode = #tpu.pipeline_mode<synchronous>, transform_indices = @transform_1, window_bounds = array<i64: 128, 128>}, {pipeline_mode = #tpu.pipeline_mode<synchronous>, transform_indices = @transform_2, window_bounds = array<i64: 1, 128>}, {transform_indices = @transform_3, window_bounds = array<i64: 16, 128>}]} {
    %c0 = arith.constant 0 : index
    %c0_0 = arith.constant 0 : index
    %0 = vector.load %arg1[%c0, %c0_0] : memref<16x128xf32, #tpu.memory_space<vmem>>, vector<16x128xf32>
    %1 = arith.truncf %0 : vector<16x128xf32> to vector<16x128xbf16>
    %c0_1 = arith.constant 0 : index
    %c0_2 = arith.constant 0 : index
    %2 = vector.load %arg2[%c0_1, %c0_2] : memref<128x128xbf16, #tpu.memory_space<vmem>>, vector<128x128xbf16>
    %cst = arith.constant dense<0.000000e+00> : vector<16x128xf32>
    %3 = tpu.matmul %1, %2, %cst {dimension_numbers = #tpu.dot_dimension_numbers<[1], [0], [0], [1], [0, 0, 1, 1], [], []>} : vector<16x128xbf16>, vector<128x128xbf16>, vector<16x128xf32> -> vector<16x128xf32>
    %c0_3 = arith.constant 0 : index
    %c0_4 = arith.constant 0 : index
    %4 = vector.load %arg3[%c0_3, %c0_4] : memref<1x128xf32, #tpu.memory_space<vmem>>, vector<1x128xf32>
    %5 = vector.broadcast %4 : vector<1x128xf32> to vector<16x128xf32>
    %6 = arith.addf %3, %5 : vector<16x128xf32>
    %7 = arith.addf %6, %0 : vector<16x128xf32>
    %c0_5 = arith.constant 0 : index
    %c0_6 = arith.constant 0 : index
    %8 = vector.load %arg4[%c0_5, %c0_6] : memref<16x128xf32, #tpu.memory_space<vmem>>, vector<16x128xf32>
    tpu.vector_store %arg4[%c0_5, %c0_6], %7 {strides = array<i32>} : memref<16x128xf32, #tpu.memory_space<vmem>>, vector<16x128xf32>,
    return
  }
  func.func @transform_0(%arg0: i32) -> (i32, i32) {
    %c0_i32 = arith.constant 0 : i32
    %c0_i32_0 = arith.constant 0 : i32
    return %arg0, %c0_i32 : i32, i32
  }
  func.func @transform_1(%arg0: i32) -> (i32, i32) {
    %c0_i32 = arith.constant 0 : i32
    %c0_i32_0 = arith.constant 0 : i32
    %c0_i32_1 = arith.constant 0 : i32
    return %c0_i32, %c0_i32_0 : i32, i32
  }
  func.func @transform_2(%arg0: i32) -> (i32, i32) {
    %c0_i32 = arith.constant 0 : i32
    %c0_i32_0 = arith.constant 0 : i32
    %c0_i32_1 = arith.constant 0 : i32
    return %c0_i32, %c0_i32_0 : i32, i32
  }
  func.func @transform_3(%arg0: i32) -> (i32, i32) {
    %c0_i32 = arith.constant 0 : i32
    %c0_i32_0 = arith.constant 0 : i32
    return %arg0, %c0_i32 : i32, i32
  }
}

</mosaic_0001>

<bundles_post_ra>
// kernel: forward.1
= control target key start
LH: loop header
LB: loop body
LE: loop exit
PB: predicated region body
PF: predicated region fallthrough
CT: control target
= control target key end

     0   :  { %s207_s1 = inlined_call_operand.vmem [shape: bf16[128,128], index: 1, kind: input, shape index: {}]   ;;  %s208_s2 = inlined_call_operand.vmem [shape: f32[1,128], index: 2, kind: input, shape index: {}]   ;;  %s209_s0 = inlined_call_operand.vmem [shape: f32[16,128], index: 0, kind: input, shape index: {}]   ;;  %s210_s3 = inlined_call_operand.vmem [shape: f32[16,128], index: 3, kind: output, shape index: {}]  }
   0x1   :  { %v146_v0 = vld [vmem:[%s207_s1 + $0x38] sm:$0xff]  ;;  %v145_v1 = vld [vmem:[%s207_s1 + $0x30] sm:$0xff]  ;;  %v144_v2 = vld [vmem:[%s207_s1 + $0x28] sm:$0xff] }
   0x2   :  { %85 = vmatpush.bf16.msra.mxu0 %v146_v0  ;;  %v143_v3 = vld [vmem:[%s207_s1 + $0x20] sm:$0xff]  ;;  %v142_v4 = vld [vmem:[%s207_s1 + $0x18] sm:$0xff]  ;;  %v141_v5 = vld [vmem:[%s207_s1 + $0x10] sm:$0xff] }
   0x3   :  { %v140_v6 = vld [vmem:[%s207_s1 + $0x8] sm:$0xff]  ;;  %v139_v7 = vld [vmem:[%s207_s1] sm:$0xff] }
   0x4   :  { %v14_v8 = vld [vmem:[%s209_s0] sm:$0xff]  ;;  %v15_v9 = vld [vmem:[%s209_s0 + $0x8] sm:$0xff] }
   0x5   :  { %v16_v10 = vpack.c.bf16 %v15_v9, %v14_v8  ;;  %v147_v11 = vld [vmem:[%s208_s2] ss:$0 sm:$0xff] }
   0x6   :  { %86 = vmatpush.bf16.msra.mxu0 %v145_v1 }
   0xa   :  { %87 = vmatpush.bf16.msra.mxu0 %v144_v2 }
   0xe   :  { %88 = vmatpush.bf16.msra.mxu0 %v143_v3 }
  0x12   :  { %89 = vmatpush.bf16.msra.mxu0 %v142_v4 }
  0x16   :  { %90 = vmatpush.bf16.msra.mxu0 %v141_v5 }
  0x1a   :  { %91 = vmatpush.bf16.msra.mxu0 %v140_v6 }
  0x1e   :  { %92 = vmatpush.bf16.msra.mxu0 %v139_v7 }
  0x21   :  { %93 = vmatmul.bf16.vlgmr.msra.gmra.mxu0 %v16_v10 }
  0x9e   :  { %v94_v12 = vpop.f32.mrf.mxu0 }
  0x9f   :  { %v95_v13 = vadd.f32 %v147_v11, %v94_v12 }
  0xa1   :  { %v99_v14 = vadd.f32 %v95_v13, %v14_v8 }
  0xa3   :  { %101 = vst [vmem:[%s210_s3] sm:$0xff] %v99_v14 }
  0xa6   :  { %v96_v15 = vpop.f32.mrf.mxu0 }
  0xa7   :  { %v97_v16 = vadd.f32 %v147_v11, %v96_v15 }
  0xa9   :  { %v100_v17 = vadd.f32 %v97_v16, %v15_v9 }
  0xab   :  { %102 = vst [vmem:[%s210_s3 + $0x8] sm:$0xff] %v100_v17 }

</bundles_post_ra>
